<compile_context>
chip_gen: v6e
topology: v6e:2x2x1
jax: 0.10.0
libtpu: 0.0.40
codegen_flags: <defaults>
</compile_context>

<pallas_src>
import jax
import jax.numpy as jnp
from jax.experimental import pallas as pl
from jax.experimental.pallas import tpu as pltpu

NUM_CLASSES = 50

# Tile caps — conservative across generations (v7x has 64 MiB VMEM; these tiles
# keep 2-deep double-buffering well under every chip's scoped-VMEM default).
_TM_MAX = 256   # rows of x / output      (multiple of 8 sublanes, fills MXU)
_TN_MAX = 256   # output features         (multiple of 128 lanes)
_TK_MAX = 512   # reduction (F_in) chunk  (multiple of 128 lanes)


def _round_up(x, m):
    return (x + m - 1) // m * m


# ---------------------------------------------------------------------------
# Pallas kernel: tiled y = x @ W_t + b with f32 accumulation
# ---------------------------------------------------------------------------
def _linear_kernel(x_ref, wt_ref, b_ref, o_ref, acc_ref):
    k = pl.program_id(2)

    @pl.when(k == 0)
    def _():
        # Initialize the accumulator with the broadcast bias: the bias add is
        # fused into the zero-init pass instead of costing a second VPU sweep
        # over the (tm, tn) tile in the epilogue.
        acc_ref[...] = jnp.broadcast_to(
            b_ref[...].astype(jnp.float32), acc_ref.shape)

    acc_ref[...] += jnp.dot(
        x_ref[...], wt_ref[...], preferred_element_type=jnp.float32
    )

    @pl.when(k == pl.num_programs(2) - 1)
    def _():
        o_ref[...] = acc_ref[...].astype(o_ref.dtype)


@jax.jit
def pallas_linear(x, w_t, bias):
    """x: (B, F_in), w_t: (F_in, F_out) [already transposed], bias: (F_out,)."""
    B, F_in = x.shape
    F_out = w_t.shape[1]

    # --- adaptive, (8,128)-aligned tile sizes (shapes are static at trace time) ---
    tm = min(_TM_MAX, _round_up(B, 8))
    tn = min(_TN_MAX, _round_up(F_out, 128))
    tk = min(_TK_MAX, _round_up(F_in, 128))

    M = _round_up(B, tm)
    N = _round_up(F_out, tn)      # lane-dense output (multiple of 128)
    K = _round_up(F_in, tk)

    # --- pad to tile multiples only when needed (zero-padding is exact for matmul) ---
    xp = x if (M == B and K == F_in) else jnp.pad(x, ((0, M - B), (0, K - F_in)))
    wp = w_t if (K == F_in and N == F_out) else jnp.pad(
        w_t, ((0, K - F_in), (0, N - F_out)))
    bp = (bias if N == F_out else jnp.pad(bias, (0, N - F_out))).reshape(1, N)

    grid = (M // tm, N // tn, K // tk)

    # --- explicit VMEM budget: 2x-buffered input/output tiles + accumulator ---
    itemsize = 4
    tile_bytes = (2 * (tm * tk + tk * tn + tn)   # double-buffered inputs
                  + 2 * (tm * tn)                # double-buffered output
                  + (tm * tn)) * itemsize        # f32 accumulator scratch
    vmem_limit = min(64 << 20, max(16 << 20, tile_bytes + (4 << 20)))

    out_padded = pl.pallas_call(
        _linear_kernel,
        out_shape=jax.ShapeDtypeStruct((M, N), x.dtype),
        grid_spec=pltpu.PrefetchScalarGridSpec(
            num_scalar_prefetch=0,
            grid=grid,
            in_specs=[
                pl.BlockSpec((tm, tk), lambda i, j, k: (i, k)),   # x tile
                pl.BlockSpec((tk, tn), lambda i, j, k: (k, j)),   # W_t tile
                pl.BlockSpec((1, tn), lambda i, j, k: (0, j)),    # bias (N only)
            ],
            out_specs=pl.BlockSpec((tm, tn), lambda i, j, k: (i, j)),
            scratch_shapes=[pltpu.VMEM((tm, tn), jnp.float32)],
        ),
        compiler_params=pltpu.CompilerParams(
            dimension_semantics=("parallel", "parallel", "arbitrary"),
            vmem_limit_bytes=vmem_limit,
        ),
    )(xp, wp, bp)

    if M == B and N == F_out:
        return out_padded
    return out_padded[:B, :F_out]


# ---------------------------------------------------------------------------
# Module-equivalent wrapper
# ---------------------------------------------------------------------------
class Linear:
    """JAX/Pallas equivalent of the PyTorch `Linear` module.

    Note: the PyTorch code builds the multi-head list via
    `[_linear_factory()] * NUM_CLASSES`, which repeats the SAME module object,
    so all heads share identical parameters. We reproduce that by storing a
    single (weight, bias) pair regardless of `multi_head`.
    """

    def __init__(self, multi_head, num_features_in, num_features_out, key):
        self.multi_head = multi_head
        self.num_features_in = num_features_in
        self.num_features_out = num_features_out
        kw, kb = jax.random.split(key)
        # Deterministic init matching nn.Linear's uniform(-1/sqrt(fan_in), +)
        bound = 1.0 / (num_features_in ** 0.5)
        self.weight = jax.random.uniform(
            kw, (num_features_out, num_features_in), jnp.float32, -bound, bound)
        self.bias = jax.random.uniform(
            kb, (num_features_out,), jnp.float32, -bound, bound)
        # Transpose ONCE at construction so no per-call HBM transpose is paid.
        self.weight_t = jnp.asarray(self.weight.T)   # (F_in, F_out)

    def __call__(self, x, idx=None):
        if self.multi_head:
            assert idx is not None, 'Pass head idx in multi-headed mode.'
            # All heads alias the same params (see class docstring), so idx
            # only needs to be validated, not used for selection.
            assert 0 <= idx < NUM_CLASSES
            return pallas_linear(x, self.weight_t, self.bias)
        return pallas_linear(x, self.weight_t, self.bias)


if __name__ == "__main__":
    key = jax.random.PRNGKey(0)
    k_x, k_params, k_big = jax.random.split(key, 3)

    # ---- small demo shapes (module-sized) ----
    batch = 8
    num_features_in = 32
    num_features_out = 16

    x = jax.random.normal(k_x, (batch, num_features_in), jnp.float32)

    mod = Linear(multi_head=False, num_features_in=num_features_in,
                 num_features_out=num_features_out, key=k_params)
    y = jax.block_until_ready(mod(x))

    mod_mh = Linear(multi_head=True, num_features_in=num_features_in,
                    num_features_out=num_features_out, key=k_params)
    y_mh = jax.block_until_ready(mod_mh(x, idx=3))

    ref = x @ mod.weight.T + mod.bias
    assert y.shape == (batch, num_features_out)
    assert jnp.allclose(y, ref, atol=1e-5), "mismatch vs reference (small)"
    assert jnp.allclose(y_mh, ref, atol=1e-5), "multi-head mismatch vs reference"

    # ---- larger shape to exercise the tiled multi-step (M,N,K) grid ----
    kb_x, kb_w, kb_b = jax.random.split(k_big, 3)
    Bb, Fi, Fo = 384, 1024, 640
    xb = jax.random.normal(kb_x, (Bb, Fi), jnp.float32)
    wb = jax.random.normal(kb_w, (Fo, Fi), jnp.float32) * 0.02
    bb = jax.random.normal(kb_b, (Fo,), jnp.float32) * 0.02
    yb = jax.block_until_ready(pallas_linear(xb, wb.T, bb))
    refb = jnp.dot(xb, wb.T, precision=jax.lax.Precision.HIGHEST) + bb
    assert yb.shape == (Bb, Fo)
    assert jnp.allclose(yb, refb, rtol=1e-3, atol=1e-3), "mismatch vs reference (tiled)"

    print("KERNEL_OK")
</pallas_src>

<mosaic_0001>
module attributes {stable_mosaic.version = 11 : i64} {
  func.func @_linear_kernel(%arg0: i32, %arg1: i32, %arg2: i32, %arg3: memref<8x128xf32, #tpu.memory_space<vmem>>, %arg4: memref<128x128xf32, #tpu.memory_space<vmem>>, %arg5: memref<1x128xf32, #tpu.memory_space<vmem>>, %arg6: memref<8x128xf32, #tpu.memory_space<vmem>>, %arg7: memref<8x128xf32, #tpu.memory_space<vmem>>) attributes {dimension_semantics = [#tpu.dimension_semantics<parallel>, #tpu.dimension_semantics<parallel>, #tpu.dimension_semantics<arbitrary>], iteration_bounds = array<i64: 1, 1, 1>, scalar_prefetch = 0 : i64, scratch_operands = 1 : i64, tpu.core_type = #tpu.core_type<tc>, window_params = [{transform_indices = @transform_0, window_bounds = array<i64: 8, 128>}, {transform_indices = @transform_1, window_bounds = array<i64: 128, 128>}, {transform_indices = @transform_2, window_bounds = array<i64: 1, 128>}, {transform_indices = @transform_3, window_bounds = array<i64: 8, 128>}]} {
    %c0_i32 = arith.constant 0 : i32
    %0 = arith.cmpi eq, %arg2, %c0_i32 : i32
    %1 = arith.extui %0 : i1 to i32
    %c0_i32_0 = arith.constant 0 : i32
    %2 = arith.cmpi ne, %1, %c0_i32_0 : i32
    scf.if %2 {
      %c0_10 = arith.constant 0 : index
      %c0_11 = arith.constant 0 : index
      %12 = vector.load %arg5[%c0_10, %c0_11] : memref<1x128xf32, #tpu.memory_space<vmem>>, vector<1x128xf32>
      %13 = vector.shape_cast %12 : vector<1x128xf32> to vector<1x128xf32>
      %14 = vector.broadcast %13 : vector<1x128xf32> to vector<8x128xf32>
      %c0_12 = arith.constant 0 : index
      %c0_13 = arith.constant 0 : index
      %15 = vector.load %arg7[%c0_12, %c0_13] : memref<8x128xf32, #tpu.memory_space<vmem>>, vector<8x128xf32>
      tpu.vector_store %arg7[%c0_12, %c0_13], %14 {strides = array<i32>} : memref<8x128xf32, #tpu.memory_space<vmem>>, vector<8x128xf32>,
    } else {
    }
    %c0 = arith.constant 0 : index
    %c0_1 = arith.constant 0 : index
    %3 = vector.load %arg7[%c0, %c0_1] : memref<8x128xf32, #tpu.memory_space<vmem>>, vector<8x128xf32>
    %c0_2 = arith.constant 0 : index
    %c0_3 = arith.constant 0 : index
    %4 = vector.load %arg3[%c0_2, %c0_3] : memref<8x128xf32, #tpu.memory_space<vmem>>, vector<8x128xf32>
    %c0_4 = arith.constant 0 : index
    %c0_5 = arith.constant 0 : index
    %5 = vector.load %arg4[%c0_4, %c0_5] : memref<128x128xf32, #tpu.memory_space<vmem>>, vector<128x128xf32>
    %cst = arith.constant dense<0.000000e+00> : vector<8x128xf32>
    %6 = tpu.matmul %4, %5, %cst {dimension_numbers = #tpu.dot_dimension_numbers<[1], [0], [0], [1], [0, 0, 1, 1], [], []>} : vector<8x128xf32>, vector<128x128xf32>, vector<8x128xf32> -> vector<8x128xf32>
    %7 = arith.addf %3, %6 : vector<8x128xf32>
    %c0_6 = arith.constant 0 : index
    %c0_7 = arith.constant 0 : index
    %8 = vector.load %arg7[%c0_6, %c0_7] : memref<8x128xf32, #tpu.memory_space<vmem>>, vector<8x128xf32>
    tpu.vector_store %arg7[%c0_6, %c0_7], %7 {strides = array<i32>} : memref<8x128xf32, #tpu.memory_space<vmem>>, vector<8x128xf32>,
    %c0_i32_8 = arith.constant 0 : i32
    %9 = arith.cmpi eq, %arg2, %c0_i32_8 : i32
    %10 = arith.extui %9 : i1 to i32
    %c0_i32_9 = arith.constant 0 : i32
    %11 = arith.cmpi ne, %10, %c0_i32_9 : i32
    scf.if %11 {
      %c0_10 = arith.constant 0 : index
      %c0_11 = arith.constant 0 : index
      %12 = vector.load %arg7[%c0_10, %c0_11] : memref<8x128xf32, #tpu.memory_space<vmem>>, vector<8x128xf32>
      %c0_12 = arith.constant 0 : index
      %c0_13 = arith.constant 0 : index
      %13 = vector.load %arg6[%c0_12, %c0_13] : memref<8x128xf32, #tpu.memory_space<vmem>>, vector<8x128xf32>
      tpu.vector_store %arg6[%c0_12, %c0_13], %12 {strides = array<i32>} : memref<8x128xf32, #tpu.memory_space<vmem>>, vector<8x128xf32>,
    } else {
    }
    return
  }
  func.func @transform_0(%arg0: i32, %arg1: i32, %arg2: i32) -> (i32, i32) {
    %c0_i32 = arith.constant 0 : i32
    return %arg0, %arg2 : i32, i32
  }
  func.func @transform_1(%arg0: i32, %arg1: i32, %arg2: i32) -> (i32, i32) {
    %c0_i32 = arith.constant 0 : i32
    return %arg2, %arg1 : i32, i32
  }
  func.func @transform_2(%arg0: i32, %arg1: i32, %arg2: i32) -> (i32, i32) {
    %c0_i32 = arith.constant 0 : i32
    %c0_i32_0 = arith.constant 0 : i32
    return %c0_i32, %arg1 : i32, i32
  }
  func.func @transform_3(%arg0: i32, %arg1: i32, %arg2: i32) -> (i32, i32) {
    %c0_i32 = arith.constant 0 : i32
    return %arg0, %arg1 : i32, i32
  }
}

</mosaic_0001>

<bundles_post_ra>
// kernel: pallas_linear.1
= control target key start
LH: loop header
LB: loop body
LE: loop exit
PB: predicated region body
PF: predicated region fallthrough
CT: control target
= control target key end

     0   :  { %v214_v1 = vmov 0.0   ;;  %vm215_vm0 = vmmov 0   ;;  %s294_s0 = inlined_call_operand.vmem [shape: f32[8,128], index: 0, kind: input, shape index: {}]   ;;  %s295_s1 = inlined_call_operand.vmem [shape: f32[128,128], index: 1, kind: input, shape index: {}]   ;;  %s296_s2 = inlined_call_operand.vmem [shape: f32[1,128], index: 2, kind: input, shape index: {}]   ;;  %s297_s3 = inlined_call_operand.hbm [shape: f32[8,128], index: 3, kind: output, shape index: {}]  }
   0x1   :  { %v44_v0 = vld [vmem:[%s295_s1 + $0x78] sm:$0xff]  ;;  %154 = vmatprep.subr.mxu0 %v214_v1  ;;  %v43_v2 = vld [vmem:[%s295_s1 + $0x70] sm:$0xff]  ;;  %186 = vmatprep.mubr.msk.f32.mxu0 %vm215_vm0, %v214_v1  ;;  %v42_v3 = vld [vmem:[%s295_s1 + $0x68] sm:$0xff] }
   0x2   :  { %155 = vmatpush3.msra.mxu0 %v44_v0  ;;  %v41_v4 = vld [vmem:[%s295_s1 + $0x60] sm:$0xff] }
   0x3   :  { %156 = vmatprep.subr.mxu0 %v214_v1 }
   0x4   :  { %157 = vmatpush3.msra.mxu0 %v43_v2 }
   0x5   :  { %158 = vmatprep.subr.mxu0 %v214_v1 }
   0x6   :  { %159 = vmatpush3.msra.mxu0 %v42_v3 }
   0x7   :  { %8 = vsyncpa [#allocation4], 0  ;;  %160 = vmatprep.subr.mxu0 %v214_v1  ;;  %v40_v5 = vld [vmem:[%s295_s1 + $0x58] sm:$0xff]  ;;  %v39_v6 = vld [vmem:[%s295_s1 + $0x50] sm:$0xff]  ;;  %s216_s21 = smov [#allocation3]  }
   0x8   :  { %161 = vmatpush3.msra.mxu0 %v41_v4  ;;  %v38_v7 = vld [vmem:[%s295_s1 + $0x48] sm:$0xff]  ;;  %v37_v8 = vld [vmem:[%s295_s1 + $0x40] sm:$0xff]  ;;  %v36_v9 = vld [vmem:[%s295_s1 + $0x38] sm:$0xff]  ;;  %s128_s22 = sshll.u32 %s216_s21, 4  ;;  %s129_s22 = int_to_ptr.vmem [resolvable:$true] %s128_s22 }
   0x9   :  { %162 = vmatprep.subr.mxu0 %v214_v1  ;;  %v35_v10 = vld [vmem:[%s295_s1 + $0x30] sm:$0xff]  ;;  %v34_v11 = vld [vmem:[%s295_s1 + $0x28] sm:$0xff]  ;;  %v33_v12 = vld [vmem:[%s295_s1 + $0x20] sm:$0xff]  ;;  %p197_p1 = scmp.lt.s32.totalorder %s129_s22, %s129_s22 }
   0xa   :  { %163 = vmatpush3.msra.mxu0 %v40_v5  ;;  %v32_v13 = vld [vmem:[%s295_s1 + $0x18] sm:$0xff]  ;;  %v31_v14 = vld [vmem:[%s295_s1 + $0x10] sm:$0xff]  ;;  %v30_v15 = vld [vmem:[%s295_s1 + $0x8] sm:$0xff] }
   0xb   :  { %164 = vmatprep.subr.mxu0 %v214_v1  ;;  %v29_v16 = vld [vmem:[%s295_s1] sm:$0xff]  ;;  %s192_s1 = scalar_lea.vmem %s129_s22, 128 }
   0xc   :  { %165 = vmatpush3.msra.mxu0 %v39_v6  ;;  %v28_v17 = vld [vmem:[%s294_s0] sm:$0xff]  ;;  %p193_p0 = scmp.ne.s32.totalorder %s129_s22, %s192_s1  ;;  %p198_p2 = scmp.lt.s32.totalorder %s192_s1, %s192_s1 }
   0xd   :  { %166 = vmatprep.subr.mxu0 %v214_v1  ;;  %v136_v18 = vld [vmem:[%s296_s2] ss:$0 sm:$0xff] }
   0xe   :  { %167 = vmatpush3.msra.mxu0 %v38_v7  ;;  %p199_p3 = por %p198_p2, %p197_p1 }
   0xf   :  { %168 = vmatprep.subr.mxu0 %v214_v1 }
  0x10   :  { %169 = vmatpush3.msra.mxu0 %v37_v8  ;;  %p200_p4 = pnand %p199_p3, %p193_p0 }
  0x11   :  { %170 = vmatprep.subr.mxu0 %v214_v1 }
  0x12   :  { %171 = vmatpush3.msra.mxu0 %v36_v9 }
  0x13   :  { %172 = vmatprep.subr.mxu0 %v214_v1 }
  0x14   :  { %173 = vmatpush3.msra.mxu0 %v35_v10 }
  0x15   :  { %174 = vmatprep.subr.mxu0 %v214_v1 }
  0x16   :  { %175 = vmatpush3.msra.mxu0 %v34_v11 }
  0x17   :  { %176 = vmatprep.subr.mxu0 %v214_v1 }
  0x18   :  { %177 = vmatpush3.msra.mxu0 %v33_v12 }
  0x19   :  { %178 = vmatprep.subr.mxu0 %v214_v1 }
  0x1a   :  { %179 = vmatpush3.msra.mxu0 %v32_v13 }
  0x1b   :  { %180 = vmatprep.subr.mxu0 %v214_v1 }
  0x1c   :  { %181 = vmatpush3.msra.mxu0 %v31_v14 }
  0x1d   :  { %182 = vmatprep.subr.mxu0 %v214_v1 }
  0x1e   :  { %183 = vmatpush3.msra.mxu0 %v30_v15 }
  0x1f   :  { %184 = vmatprep.subr.mxu0 %v214_v1 }
  0x20   :  { %185 = vmatpush3.msra.mxu0 %v29_v16 }
  0x21   :  { %187 = vmatmul.mubr.f32.vlgmr.msra.gmra.mxu0 %v28_v17 }
  0xe1   :  { %v111_v19 = vpop.f32.mrf.mxu0 }
  0xe2   :  { %v115_v20 = vadd.f32 %v136_v18, %v111_v19 }
  0xe3   :  { %v188_v21 = vpop.f32.mrf.mxu0 }
  0xe4   :  { %121 = vst [vmem:[#allocation3] sm:$0xff] %v115_v20 }
  0xe5   :  { %203 = shalt.err (!%p200_p4)
}
  0xe6   :  { %131 = dma.vmem_to_hbm [thread:$0]  %s129_s22, 128, %s297_s3, [#allocation4]  }
  0xe7   :  { %212 = dma.done.wait [#allocation4], 128  }
  0xe8   :  { %213 = vsyncadd [#allocation4], 4294967168 }
  0xe9   :  { %135 = vsyncpa [#allocation4], 1 }

</bundles_post_ra>
